<compile_context>
chip_gen: v5e
topology: v5e:2x2
jax: 0.10.0
libtpu: 0.0.40
codegen_flags: <defaults>
</compile_context>

<pallas_src>
import numpy as np
import jax
import jax.numpy as jnp
from jax.experimental import pallas as pl
from jax.experimental.pallas import tpu as pltpu


# ---------------------------------------------------------------------------
# Tile-size helpers
# ---------------------------------------------------------------------------

_BLOCK_BUDGET_BYTES = 4 * 1024 * 1024  # per-input block; double-buffered by Pallas


def _choose_tiles(B, S, H, itemsize, budget_bytes=_BLOCK_BUDGET_BYTES):
    """Pick (TB, TS) batch/sequence tiles for mean pooling.

    Constraints:
      * TB | B and (TB == B or TB % 8 == 0)  -> legal (TB, 1, H) output block
      * TS | S and (TS == S or TS % 128 == 0) -> legal lane-dense (TB,1,TS) mask
        block and (TS, H) hidden block; divisibility avoids padded mask reads.
    Largest tile under `budget_bytes` wins (amortizes per-grid-step overhead,
    keeps VMEM within the scoped default on v5e/v6e/v7x).
    """
    tb_options = [d for d in range(B, 0, -1)
                  if B % d == 0 and (d == B or d % 8 == 0)]
    ts_options = [d for d in range(S, 0, -1)
                  if S % d == 0 and (d == S or d % 128 == 0)]
    for tb in tb_options:
        for ts in ts_options:
            if tb * ts * H * itemsize <= budget_bytes:
                return tb, ts
    # TODO(synk): for awkward (prime, huge) S/B fall back to the smallest legal
    # tiles even if over budget; production shapes (S,H multiples of 128) never
    # hit this branch.
    return tb_options[-1], ts_options[-1]


def _largest_divisor_under(n, limit):
    limit = max(1, limit)
    for d in range(min(n, limit), 0, -1):
        if n % d == 0:
            return d
    return 1


# ---------------------------------------------------------------------------
# Pallas kernels
# ---------------------------------------------------------------------------

def _mean_pool_kernel(h_ref, m_ref, o_ref, sum_sc, cnt_sc):
    """Masked mean over the sequence axis.

    h_ref : (TB, TS, H)  hidden-state tile (native dtype, no f32 upcast)
    m_ref : (TB, 1, TS)  lane-dense attention-mask tile (same dtype as h)
    o_ref : (TB, 1, H)   pooled output tile (written on the last S step)
    sum_sc: (TB, 1, H) f32 accumulator, cnt_sc: (TB, 1, 1) f32 token counts
    """
    s = pl.program_id(1)

    @pl.when(s == 0)
    def _init():
        sum_sc[...] = jnp.zeros_like(sum_sc)
        cnt_sc[...] = jnp.zeros_like(cnt_sc)

    h = h_ref[...]                      # (TB, TS, H)
    m = m_ref[...]                      # (TB, 1, TS)
    # Masked sum as a batched (1,TS)x(TS,H) contraction on the MXU, f32 acc.
    sum_sc[...] += jnp.einsum("bos,bsh->boh", m, h,
                              preferred_element_type=jnp.float32)
    cnt_sc[...] += jnp.sum(m.astype(jnp.float32), axis=2, keepdims=True)

    @pl.when(s == pl.num_programs(1) - 1)
    def _finalize():
        inv = pl.reciprocal(jnp.maximum(cnt_sc[...], 1e-9), approx=True)
        o_ref[...] = (sum_sc[...] * inv).astype(o_ref.dtype)


def _cls_pool_kernel(h_ref, o_ref):
    """CLS pooling: h_ref is only the first 8-row window, take token 0."""
    o_ref[...] = h_ref[:, 0:1, :]        # (TB, 1, H), no in-kernel reshape


def _last_pool_kernel(idx_ref, h_ref, o_ref):
    """Last non-padding token.

    idx_ref : SMEM (B, 2) int32 — [:,0] window block index (used by the
              index_map to DMA only that 8-token window), [:,1] offset inside
              the window.
    h_ref   : (1, W, H)  the 8-token window containing the last token.
    o_ref   : (1, 1, H)
    """
    b = pl.program_id(0)
    off = idx_ref[b, 1]
    h = h_ref[...]                                           # (1, W, H)
    pos = jax.lax.broadcasted_iota(jnp.int32, (1, h.shape[1], 1), 1)
    picked = jnp.where(pos == off, h, jnp.zeros_like(h))     # NaN-safe select
    o_ref[...] = jnp.sum(picked, axis=1, keepdims=True).astype(o_ref.dtype)


# ---------------------------------------------------------------------------
# Wrappers
# ---------------------------------------------------------------------------

def _mean_pool(last_hidden_state, attention_mask):
    B, S, H = last_hidden_state.shape
    dtype = last_hidden_state.dtype
    itemsize = jnp.dtype(dtype).itemsize
    TB, TS = _choose_tiles(B, S, H, itemsize)

    # Lane-dense mask in the hidden-state dtype (values are exact 0/1).
    mask3 = attention_mask.astype(dtype).reshape(B, 1, S)

    out = pl.pallas_call(
        _mean_pool_kernel,
        out_shape=jax.ShapeDtypeStruct((B, 1, H), dtype),
        grid_spec=pltpu.PrefetchScalarGridSpec(
            num_scalar_prefetch=0,
            grid=(B // TB, S // TS),
            in_specs=[
                pl.BlockSpec((TB, TS, H), lambda b, s: (b, s, 0)),
                pl.BlockSpec((TB, 1, TS), lambda b, s: (b, 0, s)),
            ],
            out_specs=pl.BlockSpec((TB, 1, H), lambda b, s: (b, 0, 0)),
            scratch_shapes=[
                pltpu.VMEM((TB, 1, H), jnp.float32),
                pltpu.VMEM((TB, 1, 1), jnp.float32),
            ],
        ),
        compiler_params=pltpu.CompilerParams(
            dimension_semantics=("parallel", "arbitrary")),
    )(last_hidden_state, mask3)
    return out.reshape(B, H)


def _cls_pool(last_hidden_state):
    B, S, H = last_hidden_state.shape
    dtype = last_hidden_state.dtype
    itemsize = jnp.dtype(dtype).itemsize
    CS = S if S < 8 else 8                     # 8-sublane-aligned window only
    TB = _largest_divisor_under(B, _BLOCK_BUDGET_BYTES // max(1, CS * H * itemsize))

    out = pl.pallas_call(
        _cls_pool_kernel,
        out_shape=jax.ShapeDtypeStruct((B, 1, H), dtype),
        grid=(B // TB,),
        in_specs=[pl.BlockSpec((TB, CS, H), lambda b: (b, 0, 0))],
        out_specs=pl.BlockSpec((TB, 1, H), lambda b: (b, 0, 0)),
        compiler_params=pltpu.CompilerParams(dimension_semantics=("parallel",)),
    )(last_hidden_state)
    return out.reshape(B, H)


def _last_pool(last_hidden_state, attention_mask):
    B, S, H = last_hidden_state.shape
    dtype = last_hidden_state.dtype
    W = S if S < 8 else 8                      # 8-token window per row

    lengths = jnp.sum(attention_mask.astype(jnp.int32), axis=1)
    # Match PyTorch semantics: an all-padding row gives index -1, which torch
    # wraps to the final token.
    wrapped = jnp.mod(lengths - 1, S)
    idx_info = jnp.stack([wrapped // W, wrapped % W], axis=1).astype(jnp.int32)

    out = pl.pallas_call(
        _last_pool_kernel,
        out_shape=jax.ShapeDtypeStruct((B, 1, H), dtype),
        grid_spec=pltpu.PrefetchScalarGridSpec(
            num_scalar_prefetch=1,
            grid=(B,),
            in_specs=[
                # DMA only the 8-token window holding the last token.
                pl.BlockSpec((1, W, H), lambda b, idx: (b, idx[b, 0], 0)),
            ],
            out_specs=pl.BlockSpec((1, 1, H), lambda b, idx: (b, 0, 0)),
        ),
        compiler_params=pltpu.CompilerParams(dimension_semantics=("arbitrary",)),
    )(idx_info, last_hidden_state)
    return out.reshape(B, H)


def pallas_pool(last_hidden_state, attention_mask, mode="mean"):
    """Pooled embeddings [B, H] from hidden states [B, S, H] and mask [B, S]."""
    if mode == "cls":
        return _cls_pool(last_hidden_state)
    if mode == "last":
        return _last_pool(last_hidden_state, attention_mask)
    return _mean_pool(last_hidden_state, attention_mask)


# ---------------------------------------------------------------------------
# Net wrapper
# ---------------------------------------------------------------------------

class NetPallas:
    def __init__(self, vocab_size=64, hidden=32, pooling="mean", seed=0):
        key = jax.random.PRNGKey(seed)
        # TODO(synk): the HF AutoModel transformer body (and the 'pooler' mode
        # that uses its pooler_output) is not translatable without a pretrained
        # checkpoint; stand in with a deterministic embedding table so
        # forward(input_ids, attention_mask) is end-to-end runnable.
        self.embed_table = (
            jax.random.normal(key, (vocab_size, hidden), jnp.float32) * 0.02
        )
        self.pooling = pooling
        self.logit_scale = jnp.ones((1,), jnp.float32) * np.log(1.0 / 0.07)

    def __call__(self, input_ids, attention_mask):
        # "transformer" stand-in (plain-JAX gather).
        last_hidden_state = self.embed_table[input_ids]        # (B, S, H)
        # Pooling hot path runs in the Pallas kernels.
        return pallas_pool(last_hidden_state, attention_mask, self.pooling)


# ---------------------------------------------------------------------------
# Pure-JAX references (mirror the PyTorch pooling modules).
# ---------------------------------------------------------------------------

def _ref_mean(h, m):
    m = m.astype(jnp.float32)[..., None]
    s = jnp.sum(h * m, axis=1)
    c = jnp.clip(jnp.sum(m, axis=1), 1e-9, None)
    return s / c


def _ref_cls(h, m):
    return h[:, 0, :]


def _ref_last(h, m):
    idx = (jnp.sum(m, axis=1) - 1).astype(jnp.int32)
    return h[jnp.arange(h.shape[0]), idx, :]


if __name__ == "__main__":
    B, S, H, V = 2, 8, 32, 64
    key = jax.random.PRNGKey(0)
    k_ids, _ = jax.random.split(key)
    input_ids = jax.random.randint(k_ids, (B, S), 0, V, dtype=jnp.int32)
    attention_mask = jnp.array(
        [[1, 1, 1, 1, 1, 1, 1, 1],
         [1, 1, 1, 1, 1, 0, 0, 0]], dtype=jnp.int32)

    refs = {"mean": _ref_mean, "cls": _ref_cls, "last": _ref_last}
    ok = True
    for mode in ("mean", "cls", "last"):
        net = NetPallas(vocab_size=V, hidden=H, pooling=mode, seed=0)
        out = jax.block_until_ready(net(input_ids, attention_mask))
        hidden = net.embed_table[input_ids]
        expected = refs[mode](hidden, attention_mask)
        # rtol covers the EUP approximate reciprocal in the mean path.
        if out.shape != (B, H) or not jnp.allclose(out, expected,
                                                   rtol=1e-3, atol=1e-4):
            ok = False
            print(f"MISMATCH in mode={mode}")

    if ok:
        print("KERNEL_OK")
</pallas_src>

<mosaic_0001>
module attributes {stable_mosaic.version = 11 : i64} {
  func.func @_mean_pool_kernel(%arg0: i32, %arg1: i32, %arg2: memref<2x8x32xf32, #tpu.memory_space<vmem>>, %arg3: memref<2x1x8xf32, #tpu.memory_space<vmem>>, %arg4: memref<2x1x32xf32, #tpu.memory_space<vmem>>, %arg5: memref<2x1x32xf32, #tpu.memory_space<vmem>>, %arg6: memref<2x1x1xf32, #tpu.memory_space<vmem>>) attributes {dimension_semantics = [#tpu.dimension_semantics<parallel>, #tpu.dimension_semantics<arbitrary>], iteration_bounds = array<i64: 1, 1>, scalar_prefetch = 0 : i64, scratch_operands = 2 : i64, tpu.core_type = #tpu.core_type<tc>, window_params = [{transform_indices = @transform_0, window_bounds = array<i64: 2, 8, 32>}, {transform_indices = @transform_1, window_bounds = array<i64: 2, 1, 8>}, {transform_indices = @transform_2, window_bounds = array<i64: 2, 1, 32>}]} {
    %c0_i32 = arith.constant 0 : i32
    %0 = arith.cmpi eq, %arg1, %c0_i32 : i32
    %1 = arith.extui %0 : i1 to i32
    %c0_i32_0 = arith.constant 0 : i32
    %2 = arith.cmpi ne, %1, %c0_i32_0 : i32
    scf.if %2 {
      %cst_21 = arith.constant 0.000000e+00 : f32
      %17 = vector.broadcast %cst_21 : f32 to vector<2x1x32xf32>
      %c0_22 = arith.constant 0 : index
      %c0_23 = arith.constant 0 : index
      %c0_24 = arith.constant 0 : index
      %18 = vector.load %arg5[%c0_22, %c0_23, %c0_24] : memref<2x1x32xf32, #tpu.memory_space<vmem>>, vector<2x1x32xf32>
      tpu.vector_store %arg5[%c0_22, %c0_23, %c0_24], %17 {strides = array<i32>} : memref<2x1x32xf32, #tpu.memory_space<vmem>>, vector<2x1x32xf32>,
      %cst_25 = arith.constant 0.000000e+00 : f32
      %19 = vector.broadcast %cst_25 : f32 to vector<2x1x1xf32>
      %c0_26 = arith.constant 0 : index
      %c0_27 = arith.constant 0 : index
      %c0_28 = arith.constant 0 : index
      %20 = vector.load %arg6[%c0_26, %c0_27, %c0_28] : memref<2x1x1xf32, #tpu.memory_space<vmem>>, vector<2x1x1xf32>
      tpu.vector_store %arg6[%c0_26, %c0_27, %c0_28], %19 {strides = array<i32>} : memref<2x1x1xf32, #tpu.memory_space<vmem>>, vector<2x1x1xf32>,
    } else {
    }
    %c0 = arith.constant 0 : index
    %c0_1 = arith.constant 0 : index
    %c0_2 = arith.constant 0 : index
    %3 = vector.load %arg2[%c0, %c0_1, %c0_2] : memref<2x8x32xf32, #tpu.memory_space<vmem>>, vector<2x8x32xf32>
    %c0_3 = arith.constant 0 : index
    %c0_4 = arith.constant 0 : index
    %c0_5 = arith.constant 0 : index
    %4 = vector.load %arg3[%c0_3, %c0_4, %c0_5] : memref<2x1x8xf32, #tpu.memory_space<vmem>>, vector<2x1x8xf32>
    %c0_6 = arith.constant 0 : index
    %c0_7 = arith.constant 0 : index
    %c0_8 = arith.constant 0 : index
    %5 = vector.load %arg5[%c0_6, %c0_7, %c0_8] : memref<2x1x32xf32, #tpu.memory_space<vmem>>, vector<2x1x32xf32>
    "tpu.trace_start"() <{level = 10 : i32, message = "bos,bsh->boh"}> : () -> ()
    %cst = arith.constant dense<0.000000e+00> : vector<2x1x32xf32>
    %6 = tpu.matmul %4, %3, %cst {dimension_numbers = #tpu.dot_dimension_numbers<[2], [1], [1], [2], [0, 0, 0, 1, 1, 2], [0], [0]>} : vector<2x1x8xf32>, vector<2x8x32xf32>, vector<2x1x32xf32> -> vector<2x1x32xf32>
    "tpu.trace_stop"() : () -> ()
    %7 = arith.addf %5, %6 : vector<2x1x32xf32>
    %c0_9 = arith.constant 0 : index
    %c0_10 = arith.constant 0 : index
    %c0_11 = arith.constant 0 : index
    %8 = vector.load %arg5[%c0_9, %c0_10, %c0_11] : memref<2x1x32xf32, #tpu.memory_space<vmem>>, vector<2x1x32xf32>
    tpu.vector_store %arg5[%c0_9, %c0_10, %c0_11], %7 {strides = array<i32>} : memref<2x1x32xf32, #tpu.memory_space<vmem>>, vector<2x1x32xf32>,
    %c0_12 = arith.constant 0 : index
    %c0_13 = arith.constant 0 : index
    %c0_14 = arith.constant 0 : index
    %9 = vector.load %arg6[%c0_12, %c0_13, %c0_14] : memref<2x1x1xf32, #tpu.memory_space<vmem>>, vector<2x1x1xf32>
    %cst_15 = arith.constant dense<0.000000e+00> : vector<2x1xf32>
    %10 = vector.multi_reduction <add>, %4, %cst_15 [2] : vector<2x1x8xf32> to vector<2x1xf32>
    %11 = vector.shape_cast %10 : vector<2x1xf32> to vector<2x1x1xf32>
    %12 = arith.addf %9, %11 : vector<2x1x1xf32>
    %c0_16 = arith.constant 0 : index
    %c0_17 = arith.constant 0 : index
    %c0_18 = arith.constant 0 : index
    %13 = vector.load %arg6[%c0_16, %c0_17, %c0_18] : memref<2x1x1xf32, #tpu.memory_space<vmem>>, vector<2x1x1xf32>
    tpu.vector_store %arg6[%c0_16, %c0_17, %c0_18], %12 {strides = array<i32>} : memref<2x1x1xf32, #tpu.memory_space<vmem>>, vector<2x1x1xf32>,
    %c0_i32_19 = arith.constant 0 : i32
    %14 = arith.cmpi eq, %arg1, %c0_i32_19 : i32
    %15 = arith.extui %14 : i1 to i32
    %c0_i32_20 = arith.constant 0 : i32
    %16 = arith.cmpi ne, %15, %c0_i32_20 : i32
    scf.if %16 {
      %c0_21 = arith.constant 0 : index
      %c0_22 = arith.constant 0 : index
      %c0_23 = arith.constant 0 : index
      %17 = vector.load %arg6[%c0_21, %c0_22, %c0_23] : memref<2x1x1xf32, #tpu.memory_space<vmem>>, vector<2x1x1xf32>
      %cst_24 = arith.constant 9.99999971E-10 : f32
      %18 = vector.broadcast %cst_24 : f32 to vector<2x1x1xf32>
      %19 = arith.maximumf %17, %18 : vector<2x1x1xf32>
      %20 = tpu.reciprocal %19 {approx = true} : vector<2x1x1xf32> -> vector<2x1x1xf32>
      %c0_25 = arith.constant 0 : index
      %c0_26 = arith.constant 0 : index
      %c0_27 = arith.constant 0 : index
      %21 = vector.load %arg5[%c0_25, %c0_26, %c0_27] : memref<2x1x32xf32, #tpu.memory_space<vmem>>, vector<2x1x32xf32>
      %22 = vector.broadcast %20 : vector<2x1x1xf32> to vector<2x1x32xf32>
      %23 = arith.mulf %21, %22 : vector<2x1x32xf32>
      %c0_28 = arith.constant 0 : index
      %c0_29 = arith.constant 0 : index
      %c0_30 = arith.constant 0 : index
      %24 = vector.load %arg4[%c0_28, %c0_29, %c0_30] : memref<2x1x32xf32, #tpu.memory_space<vmem>>, vector<2x1x32xf32>
      tpu.vector_store %arg4[%c0_28, %c0_29, %c0_30], %23 {strides = array<i32>} : memref<2x1x32xf32, #tpu.memory_space<vmem>>, vector<2x1x32xf32>,
    } else {
    }
    return
  }
  func.func @transform_0(%arg0: i32, %arg1: i32) -> (i32, i32, i32) {
    %c0_i32 = arith.constant 0 : i32
    %c0_i32_0 = arith.constant 0 : i32
    return %arg0, %arg1, %c0_i32 : i32, i32, i32
  }
  func.func @transform_1(%arg0: i32, %arg1: i32) -> (i32, i32, i32) {
    %c0_i32 = arith.constant 0 : i32
    %c0_i32_0 = arith.constant 0 : i32
    return %arg0, %c0_i32, %arg1 : i32, i32, i32
  }
  func.func @transform_2(%arg0: i32, %arg1: i32) -> (i32, i32, i32) {
    %c0_i32 = arith.constant 0 : i32
    %c0_i32_0 = arith.constant 0 : i32
    %c0_i32_1 = arith.constant 0 : i32
    return %arg0, %c0_i32, %c0_i32_0 : i32, i32, i32
  }
}

</mosaic_0001>

<bundles_post_ra>
// kernel: tpu_custom_call.1
= control target key start
LH: loop header
LB: loop body
LE: loop exit
PB: predicated region body
PF: predicated region fallthrough
CT: control target
= control target key end

     0   :  { %7 = vsyncpa [#allocation5], 0  ;;  %s317_s0 = inlined_call_operand.hbm [shape: f32[2,8,32], index: 0, kind: input, shape index: {}]   ;;  %s318_s1 = inlined_call_operand.hbm [shape: f32[2,1,8], index: 1, kind: input, shape index: {}]   ;;  %s319_s2 = inlined_call_operand.hbm [shape: f32[2,1,32], index: 2, kind: output, shape index: {}]  }
   0x1   :  { %8 = vsyncpa [#allocation8], 0 }
   0x2   :  { %9 = vsyncpa [#allocation6], 0  ;;  %s14_s11 = sshll.u32 %s317_s0, 4  ;;  %s268_s12 = smov [#allocation4]   ;;  %s15_s11 = int_to_ptr.hbm [resolvable:$true] %s14_s11 }
   0x3   :  { %s16_s13 = sshll.u32 %s268_s12, 4  ;;  %s27_s16 = sshll.u32 %s318_s1, 4  ;;  %s17_s13 = int_to_ptr.vmem [resolvable:$true] %s16_s13  ;;  %s28_s16 = int_to_ptr.hbm [resolvable:$true] %s27_s16 }
   0x4   :  { %s269_s17 = smov 128   ;;  %s270_s18 = smov 8  }
   0x5   :  { %22 = dma.hbm_to_vmem [thread:$0]  %s15_s11, 256, %s17_s13, [#allocation5], %s269_s17, %s269_s17, %s270_s18  }
   0x6   :  { %s271_s19 = smov [#allocation7]   ;;  %s272_s21 = smov 16  }
   0x7   :  { %s29_s20 = sshll.u32 %s271_s19, 4  ;;  %s273_s22 = smov 1   ;;  %s30_s20 = int_to_ptr.vmem [resolvable:$true] %s29_s20 }
   0x8   :  { %35 = dma.hbm_to_vmem [thread:$0]  %s28_s16, 32, %s30_s20, [#allocation8], %s272_s21, %s272_s21, %s273_s22  }
   0x9   :  { %262 = dma.done.wait [#allocation5], 256  }
   0xa   :  { %263 = vsyncadd [#allocation5], 4294967040 }
   0xb   :  { %264 = dma.done.wait [#allocation8], 32  }
   0xc   :  { %265 = vsyncadd [#allocation8], 4294967264  ;;  %vm51_vm0 = vcmask 0   ;;  %v274_v0 = vmov 0.0   ;;  %vm114_vm1 = vcmask 57344   ;;  %v54_v5 = vld [vmem:[#allocation4] sm:$0xff] }
   0xd   :  { %52 = vst.msk [vmem:[#allocation3] sm:$0x1] %vm51_vm0, %v274_v0  ;;  %v56_v1 = vld [vmem:[#allocation7] sm:$0x1]  ;;  %v57_v3 = vld [vmem:[#allocation7 + $0x1] sm:$0x1]  ;;  %79 = vmatpush.msra.mxu0 %v54_v5 }
   0xe   :  { %53 = vst.msk [vmem:[#allocation3 + $0x1] sm:$0x1] %vm51_vm0, %v274_v0  ;;  %v115_v2 = vsel %vm114_vm1, %v56_v1, 0.0  ;;  %v118_v4 = vsel %vm114_vm1, %v57_v3, 0.0  ;;  %vm60_vm2 = vcmask 64512   ;;  %v55_v6 = vld [vmem:[#allocation4 + $0x8] sm:$0xff] }
   0xf   :  { %116 = vadd.xlane.f32.xlu0 %v115_v2  ;;  %173 = vmatmul.msk.f32.vlgmr.msra.gmra.mxu0 %vm60_vm2, %v56_v1  ;;  %v275_v7 = vmov 0   ;;  %vm48_vm3 = vcmask 253952   ;;  %s276_s0 = smov [#allocation9]   ;;  %s159_s25 = sshll.u32 %s319_s2, 4  ;;  %s160_s25 = int_to_ptr.hbm [resolvable:$true] %s159_s25 }
  0x10   :  { %102 = vmatpush.msra.mxu1 %v55_v6  ;;  %184 = vset.pattern.permute.xlu1 %v275_v7  ;;  %49 = vst.msk [vmem:[#allocation2] sm:$0x1] %vm48_vm3, %v274_v0  ;;  %s157_s1 = sshll.u32 %s276_s0, 4  ;;  %s158_s1 = int_to_ptr.vmem [resolvable:$true] %s157_s1 }
  0x11   :  { %174 = vmatmul.msk.f32.vlgmr.msra.gmra.mxu1 %vm60_vm2, %v57_v3  ;;  %185 = vset.pattern.permute.xlu0 %v275_v7  ;;  %50 = vst.msk [vmem:[#allocation2 + $0x1] sm:$0x1] %vm48_vm3, %v274_v0 }
  0x14   :  { %v112_v8 = vld [vmem:[#allocation3] sm:$0x1] }
  0x15   :  { %v113_v11 = vld [vmem:[#allocation3 + $0x1] sm:$0x1] }
  0x17   :  { %119 = vadd.xlane.f32.xlu0 %v118_v4  ;;  %v58_v20 = vld [vmem:[#allocation2] sm:$0x1] }
  0x18   :  { %v59_v23 = vld [vmem:[#allocation2 + $0x1] sm:$0x1] }
  0x82   :  { %v117_v9 = vpop.xlane.xlu0 %116 }
  0x83   :  { %v121_v10 = vadd.f32 %v117_v9, %v112_v8 }
  0x85   :  { %124 = vst.msk [vmem:[#allocation3] sm:$0x1] %vm51_vm0, %v121_v10 }
  0x8a   :  { %v120_v12 = vpop.xlane.xlu0 %119 }
  0x8b   :  { %v122_v13 = vadd.f32 %v120_v12, %v113_v11 }
  0x8c   :  { %v129_v14 = vld [vmem:[#allocation3] sm:$0x1]  ;;  %v81_v21 = vpop.f32.mrf.mxu0 }
  0x8d   :  { %125 = vst.msk [vmem:[#allocation3 + $0x1] sm:$0x1] %vm51_vm0, %v122_v13  ;;  %v131_v15 = vmax.f32 %v129_v14, 1e-09  ;;  %v107_v22 = vadd.f32 %v81_v21, %v58_v20 }
  0x8e   :  { %v104_v24 = vpop.f32.mrf.mxu1 }
  0x8f   :  { %186 = vrcp.f32 %v131_v15  ;;  %110 = vst.msk [vmem:[#allocation2] sm:$0x1] %vm48_vm3, %v107_v22  ;;  %v108_v25 = vadd.f32 %v104_v24, %v59_v23 }
  0x91   :  { %111 = vst.msk [vmem:[#allocation2 + $0x1] sm:$0x1] %vm48_vm3, %v108_v25 }
  0x94   :  { %v130_v16 = vld [vmem:[#allocation3 + $0x1] sm:$0x1] }
  0x95   :  { %v187_v17 = vpop.eup %186  ;;  %v132_v18 = vmax.f32 %v130_v16, 1e-09 }
  0x96   :  { %139 = vperm.xlu1 %184, %v187_v17   ;;  %v135_v27 = vld [vmem:[#allocation2] sm:$0x1] }
  0x97   :  { %188 = vrcp.f32 %v132_v18 }
  0x98   :  { %v136_v31 = vld [vmem:[#allocation2 + $0x1] sm:$0x1] }
  0x9d   :  { %v189_v19 = vpop.eup %188 }
  0x9e   :  { %145 = vperm.xlu1 %184, %v189_v19  }
 0x108   :  { %v140_v26 = vpop.permute.xlu1 %139 }
 0x109   :  { %v142_v28 = vperm.slane %v140_v26, 0 }
 0x10b   :  { %v149_v29 = vmul.f32 %v142_v28, %v135_v27 }
 0x10d   :  { %151 = vst.msk [vmem:[#allocation9] sm:$0x1] %vm48_vm3, %v149_v29 }
 0x110   :  { %v146_v30 = vpop.permute.xlu1 %145 }
 0x111   :  { %v148_v32 = vperm.slane %v146_v30, 0 }
 0x113   :  { %v150_v33 = vmul.f32 %v148_v32, %v136_v31 }
 0x115   :  { %152 = vst.msk [vmem:[#allocation9 + $0x1] sm:$0x1] %vm48_vm3, %v150_v33 }
 0x116   :  { %165 = dma.vmem_to_hbm [thread:$0]  %s158_s1, 32, %s160_s25, [#allocation6], %s272_s21, %s272_s21, %s273_s22  }
 0x117   :  { %266 = dma.done.wait [#allocation6], 32  }
 0x118   :  { %267 = vsyncadd [#allocation6], 4294967264 }
 0x119   :  { %170 = vsyncpa [#allocation5], 1 }
 0x11a   :  { %171 = vsyncpa [#allocation8], 1 }
 0x11b   :  { %172 = vsyncpa [#allocation6], 1 }

</bundles_post_ra>
